<compile_context>
chip_gen: v7x
topology: tpu7x:2x2x1
jax: 0.10.0
libtpu: 0.0.40
codegen_flags: <defaults>
</compile_context>

<pallas_src>
import jax
import jax.numpy as jnp
import numpy as np
from jax.experimental import pallas as pl
from jax.experimental.pallas import tpu as pltpu

_VMEM = pl.BlockSpec(memory_space=pltpu.MemorySpace.VMEM)
_VMEM_LIMIT = 32 * 1024 * 1024   # explicit scoped-VMEM budget, safe on v5e/v6e/v7x


def _round_up(x, m):
    return ((x + m - 1) // m) * m


# -----------------------------------------------------------------------------
# Kernel 1: loop-invariant i2h projection of batch_H, tiled over flattened rows.
# -----------------------------------------------------------------------------
def _i2h_kernel(x_ref, w_ref, o_ref):
    # (tile_m, D) @ (D, H) -> (tile_m, H); bf16 operands, f32 MXU accumulation.
    o_ref[...] = jnp.dot(x_ref[...], w_ref[...],
                         preferred_element_type=jnp.float32).astype(o_ref.dtype)


def i2h_projection(batch_H, w_i2h_t, *, tile_m=512):
    """(B,T,D) @ (D,H) -> (B,T,H) bf16. Hoist out of any decode loop."""
    B, T, D = batch_H.shape
    H = w_i2h_t.shape[1]
    BT = B * T
    # Tile the row dim: multiple of 8, capped at 512 (fits v5e's smaller scoped
    # VMEM with double-buffering); small problems collapse to a single block.
    tile_m = min(tile_m, _round_up(BT, 8))
    grid = (pl.cdiv(BT, tile_m),)

    x = batch_H.reshape(BT, D).astype(jnp.bfloat16)
    w = w_i2h_t.astype(jnp.bfloat16)

    flops = 2 * BT * D * H
    bytes_accessed = 2 * (BT * D + D * H + BT * H)

    out = pl.pallas_call(
        _i2h_kernel,
        out_shape=jax.ShapeDtypeStruct((BT, H), jnp.bfloat16),
        grid_spec=pltpu.PrefetchScalarGridSpec(
            num_scalar_prefetch=0,
            grid=grid,
            in_specs=[pl.BlockSpec((tile_m, D), lambda i: (i, 0)),
                      pl.BlockSpec((D, H), lambda i: (0, 0))],
            out_specs=pl.BlockSpec((tile_m, H), lambda i: (i, 0)),
        ),
        compiler_params=pltpu.CompilerParams(
            dimension_semantics=("parallel",),          # shards across v7x's 2 TCs
            vmem_limit_bytes=_VMEM_LIMIT),
        cost_estimate=pl.CostEstimate(flops=flops, transcendentals=0,
                                      bytes_accessed=bytes_accessed),
    )(x, w)
    return out.reshape(B, T, H)


# -----------------------------------------------------------------------------
# Shared per-step attention + GRU math (used by the single-step and the fused
# decode kernels).  All biases are pre-folded into the weights via ones-
# augmented inputs; matmul operands bf16, accumulation + elementwise math f32.
# -----------------------------------------------------------------------------
def _attention_gru_math(prev_aug, prev_h, oh_aug, bh_proj, batch_h,
                        w_prev, w_score, w_in_x, w_in_e, H):
    # prev-hidden path: ONE fused (B, H+1) @ (H+1, 4H) matmul (h2h | GRU W_hh),
    # biases folded in via the ones column of prev_aug.
    pgates = jnp.dot(prev_aug.astype(jnp.bfloat16), w_prev,
                     preferred_element_type=jnp.float32)            # (B, 4H)
    ph_proj = pgates[:, :H]                                          # h2h(prev)+b
    gh = pgates[:, H:]                                               # GRU hidden gates (B, 3H)

    # Attention: tanh(i2h(batch_H) + h2h(prev)); score = VPU mul + XLU lane reduce.
    res = jnp.tanh(bh_proj.astype(jnp.float32) + ph_proj[:, None, :])   # (B, T, H)
    e = jnp.sum(res * w_score[None], axis=-1)                           # (B, T)

    # Softmax over T with EUP approx reciprocal.
    m = jnp.max(e, axis=1, keepdims=True)
    p = jnp.exp(e - m)
    alpha = p * pl.reciprocal(jnp.sum(p, axis=1, keepdims=True), approx=True)

    # context[b, d] = sum_t alpha[b, t] * batch_H[b, t, d]  (VPU mul + sublane reduce)
    context = jnp.sum(alpha[:, :, None] * batch_h.astype(jnp.float32), axis=1)  # (B, D)

    # GRU input gates: context matmul + (onehots|1) matmul (b_ih folded into the
    # latter's extra row) — the embedding contribution now lives in-kernel.
    gx = (jnp.dot(context.astype(jnp.bfloat16), w_in_x,
                  preferred_element_type=jnp.float32)
          + jnp.dot(oh_aug.astype(jnp.bfloat16), w_in_e,
                    preferred_element_type=jnp.float32))                # (B, 3H)

    # Gate slices are lane-aligned when H % 128 == 0 (production); masked at H=32.
    r = jax.nn.sigmoid(gx[:, 0 * H:1 * H] + gh[:, 0 * H:1 * H])
    z = jax.nn.sigmoid(gx[:, 1 * H:2 * H] + gh[:, 1 * H:2 * H])
    n = jnp.tanh(gx[:, 2 * H:3 * H] + r * gh[:, 2 * H:3 * H])
    h_new = (1.0 - z) * n + z * prev_h
    return h_new, alpha


# -----------------------------------------------------------------------------
# Kernel 2: single attention-GRU step (module forward semantics).
# -----------------------------------------------------------------------------
def _attn_gru_step_kernel(
    prev_aug_ref,   # (B, H+1) f32   [prev_hidden | 1]
    oh_aug_ref,     # (B, E+1) f32   [char_onehots | 1]
    bh_proj_ref,    # (B, T, H) bf16 precomputed i2h(batch_H)
    batch_h_ref,    # (B, T, D) bf16
    w_prev_ref,     # (H+1, 4H) bf16 [[w_h2h^T | w_hh^T]; [b_h2h | b_hh]]
    w_score_ref,    # (1, H)    f32
    w_in_x_ref,     # (D, 3H)   bf16 W_ih (context part)^T
    w_in_e_ref,     # (E+1, 3H) bf16 [[W_ih (embedding part)^T]; [b_ih]]
    h_out_ref,      # (B, H)    f32
    alpha_out_ref,  # (B, T)    f32
):
    H = h_out_ref.shape[1]
    prev_aug = prev_aug_ref[...]
    h_new, alpha = _attention_gru_math(
        prev_aug, prev_aug[:, :H], oh_aug_ref[...], bh_proj_ref[...],
        batch_h_ref[...], w_prev_ref[...], w_score_ref[...],
        w_in_x_ref[...], w_in_e_ref[...], H)
    h_out_ref[...] = h_new
    alpha_out_ref[...] = alpha


def _step_cost(B, T, D, H, E):
    flops = (2 * B * (H + 1) * 4 * H + 2 * B * D * 3 * H + 2 * B * (E + 1) * 3 * H
             + 6 * B * T * H + 3 * B * T * D + 20 * B * H)
    transcendentals = B * T * H + B * T + 3 * B * H
    return flops, transcendentals


def attention_gru_cell(prev_hidden, batch_H, char_onehots, kp, bh_proj=None):
    """Forward of AttentionGRUCell. Returns (cur_hidden (B,H), alpha (B,1,T)).

    Pass a precomputed `bh_proj = i2h_projection(batch_H, kp["w_i2h_t"])` when
    calling this per-step inside a decode loop (it is prev_hidden-invariant);
    for a fully fused loop use `attention_gru_decode` instead.
    """
    B, T, D = batch_H.shape
    H = prev_hidden.shape[1]
    E = char_onehots.shape[1]
    if bh_proj is None:
        bh_proj = i2h_projection(batch_H, kp["w_i2h_t"])             # (B, T, H)

    ones = jnp.ones((B, 1), jnp.float32)
    prev_aug = jnp.concatenate([prev_hidden.astype(jnp.float32), ones], axis=1)
    oh_aug = jnp.concatenate([char_onehots.astype(jnp.float32), ones], axis=1)

    flops, transcendentals = _step_cost(B, T, D, H, E)
    bytes_accessed = (4 * (B * (H + 1) + B * (E + 1) + B * H + B * T + H)
                      + 2 * (B * T * H + B * T * D + (H + 1) * 4 * H
                             + D * 3 * H + (E + 1) * 3 * H))

    h_new, alpha = pl.pallas_call(
        _attn_gru_step_kernel,
        out_shape=(jax.ShapeDtypeStruct((B, H), jnp.float32),
                   jax.ShapeDtypeStruct((B, T), jnp.float32)),
        in_specs=[_VMEM] * 8,
        out_specs=(_VMEM, _VMEM),
        compiler_params=pltpu.CompilerParams(vmem_limit_bytes=_VMEM_LIMIT),
        cost_estimate=pl.CostEstimate(flops=flops,
                                      transcendentals=transcendentals,
                                      bytes_accessed=bytes_accessed),
    )(prev_aug, oh_aug, bh_proj.astype(jnp.bfloat16),
      batch_H.astype(jnp.bfloat16),
      kp["w_prev_aug"], kp["w_score"], kp["w_in_x_t"], kp["w_in_e_aug"])

    # torch's alpha.transpose(1, 2) -> (B, 1, T): unsqueeze in the wrapper.
    return h_new, alpha[:, None, :]


# -----------------------------------------------------------------------------
# Kernel 3 (review item #1): fused L-step decode recurrence in ONE pallas_call.
# Grid over steps ("arbitrary"), hidden carried in VMEM scratch, batch_H /
# bh_proj / weights VMEM-resident across all steps (constant index_maps).
# -----------------------------------------------------------------------------
def _attn_gru_decode_kernel(
    oh_aug_ref,     # (1, B, E+1) f32  this step's [char_onehots | 1]
    bh_proj_ref,    # (B, T, H)  bf16  resident
    batch_h_ref,    # (B, T, D)  bf16  resident
    h0_aug_ref,     # (B, H+1)   f32   resident initial [hidden | 1]
    w_prev_ref,     # (H+1, 4H)  bf16  resident
    w_score_ref,    # (1, H)     f32   resident
    w_in_x_ref,     # (D, 3H)    bf16  resident
    w_in_e_ref,     # (E+1, 3H)  bf16  resident
    h_seq_ref,      # (1, B, H)  f32   out (this step)
    alpha_seq_ref,  # (1, B, T)  f32   out (this step)
    h_carry,        # (B, H+1)   f32   VMEM scratch; last column stays 1.0
):
    s = pl.program_id(0)

    @pl.when(s == 0)
    def _():
        h_carry[...] = h0_aug_ref[...]

    H = h_seq_ref.shape[2]
    prev_aug = h_carry[...]
    h_new, alpha = _attention_gru_math(
        prev_aug, prev_aug[:, :H], oh_aug_ref[0], bh_proj_ref[...],
        batch_h_ref[...], w_prev_ref[...], w_score_ref[...],
        w_in_x_ref[...], w_in_e_ref[...], H)

    h_carry[:, 0:H] = h_new           # ones column untouched
    h_seq_ref[0] = h_new
    alpha_seq_ref[0] = alpha


def attention_gru_decode(prev_hidden, batch_H, char_onehots_seq, kp):
    """Run L AttentionGRUCell steps fused in one kernel.

    char_onehots_seq: (L, B, E). Returns (h_seq (L,B,H), alpha_seq (L,B,T)).
    """
    L, B, E = char_onehots_seq.shape
    _, T, D = batch_H.shape
    H = prev_hidden.shape[1]

    bh_proj = i2h_projection(batch_H, kp["w_i2h_t"])                  # once per sequence

    ones = jnp.ones((B, 1), jnp.float32)
    h0_aug = jnp.concatenate([prev_hidden.astype(jnp.float32), ones], axis=1)
    oh_aug_seq = jnp.concatenate(
        [char_onehots_seq.astype(jnp.float32), jnp.ones((L, B, 1), jnp.float32)],
        axis=2)                                                       # (L, B, E+1)
    batch_H_bf = batch_H.astype(jnp.bfloat16)

    step_flops, step_trans = _step_cost(B, T, D, H, E)
    bytes_accessed = (2 * (B * T * H + B * T * D + (H + 1) * 4 * H
                           + D * 3 * H + (E + 1) * 3 * H)
                      + 4 * (B * (H + 1) + H)
                      + L * 4 * (B * (E + 1) + B * H + B * T))

    # VMEM residency (resident slabs ~ B*T*(D+H)*2B + weights): a few MiB at
    # production OCR sizes -> fits v7x's 64 MiB physical / 32 MiB scoped budget.
    h_seq, alpha_seq = pl.pallas_call(
        _attn_gru_decode_kernel,
        out_shape=(jax.ShapeDtypeStruct((L, B, H), jnp.float32),
                   jax.ShapeDtypeStruct((L, B, T), jnp.float32)),
        grid_spec=pltpu.PrefetchScalarGridSpec(
            num_scalar_prefetch=0,
            grid=(L,),
            in_specs=[
                pl.BlockSpec((1, B, E + 1), lambda s: (s, 0, 0)),     # per-step onehots
                pl.BlockSpec((B, T, H), lambda s: (0, 0, 0)),         # bh_proj (resident)
                pl.BlockSpec((B, T, D), lambda s: (0, 0, 0)),         # batch_H (resident)
                pl.BlockSpec((B, H + 1), lambda s: (0, 0)),           # h0_aug
                pl.BlockSpec((H + 1, 4 * H), lambda s: (0, 0)),       # w_prev_aug
                pl.BlockSpec((1, H), lambda s: (0, 0)),               # w_score
                pl.BlockSpec((D, 3 * H), lambda s: (0, 0)),           # w_in_x_t
                pl.BlockSpec((E + 1, 3 * H), lambda s: (0, 0)),       # w_in_e_aug
            ],
            out_specs=[
                pl.BlockSpec((1, B, H), lambda s: (s, 0, 0)),
                pl.BlockSpec((1, B, T), lambda s: (s, 0, 0)),
            ],
            scratch_shapes=[pltpu.VMEM((B, H + 1), jnp.float32)],     # hidden carry
        ),
        compiler_params=pltpu.CompilerParams(
            dimension_semantics=("arbitrary",),                       # sequential carry
            vmem_limit_bytes=_VMEM_LIMIT),
        cost_estimate=pl.CostEstimate(flops=L * step_flops,
                                      transcendentals=L * step_trans,
                                      bytes_accessed=bytes_accessed),
    )(oh_aug_seq, bh_proj, batch_H_bf, h0_aug,
      kp["w_prev_aug"], kp["w_score"], kp["w_in_x_t"], kp["w_in_e_aug"])
    return h_seq, alpha_seq


# -----------------------------------------------------------------------------
# Parameter construction / packing.
# -----------------------------------------------------------------------------
def make_params(key, input_size, hidden_size, num_embeddings):
    """Torch-layout parameters (same layout as nn.Linear / nn.GRUCell)."""
    H, D, E = hidden_size, input_size, num_embeddings
    ks = jax.random.split(key, 8)
    u = lambda k, shape, bound: jax.random.uniform(
        k, shape, jnp.float32, -bound, bound)
    b_lin = 1.0 / np.sqrt(H)
    b_gru = 1.0 / np.sqrt(H)
    w_ih = u(ks[4], (3 * H, D + E), b_gru)
    return {
        "w_i2h":   u(ks[0], (H, D), 1.0 / np.sqrt(D)),
        "w_h2h":   u(ks[1], (H, H), b_lin),
        "b_h2h":   u(ks[2], (1, H), b_lin),
        "w_score": u(ks[3], (1, H), b_lin),
        "w_ih_x":  w_ih[:, :D],
        "w_ih_e":  w_ih[:, D:],
        "w_hh":    u(ks[5], (3 * H, H), b_gru),
        "b_ih":    u(ks[6], (1, 3 * H), b_gru),
        "b_hh":    u(ks[7], (1, 3 * H), b_gru),
    }


def pack_params(p):
    """Pre-transpose / fuse / bias-fold weights into kernel layout (bf16 matmul operands)."""
    w_prev = jnp.concatenate([p["w_h2h"].T, p["w_hh"].T], axis=1)          # (H, 4H)
    b_prev = jnp.concatenate([p["b_h2h"], p["b_hh"]], axis=1)              # (1, 4H)
    w_prev_aug = jnp.concatenate([w_prev, b_prev], axis=0)                 # (H+1, 4H)
    w_in_e_aug = jnp.concatenate([p["w_ih_e"].T, p["b_ih"]], axis=0)       # (E+1, 3H)
    return {
        "w_i2h_t":    p["w_i2h"].T.astype(jnp.bfloat16),                   # (D, H)
        "w_prev_aug": w_prev_aug.astype(jnp.bfloat16),                     # (H+1, 4H)
        "w_score":    p["w_score"].astype(jnp.float32),                    # (1, H)
        "w_in_x_t":   p["w_ih_x"].T.astype(jnp.bfloat16),                  # (D, 3H)
        "w_in_e_aug": w_in_e_aug.astype(jnp.bfloat16),                     # (E+1, 3H)
    }


def reference_forward(prev_hidden, batch_H, char_onehots, p):
    """Pure-JAX f32 replica of the PyTorch forward (for verification)."""
    H = prev_hidden.shape[1]
    bh_proj = jnp.einsum("btd,hd->bth", batch_H, p["w_i2h"])
    ph_proj = prev_hidden @ p["w_h2h"].T + p["b_h2h"]
    res = jnp.tanh(bh_proj + ph_proj[:, None, :])
    e = jnp.einsum("bth,h->bt", res, p["w_score"][0])
    alpha = jax.nn.softmax(e, axis=1)
    context = jnp.einsum("bt,btd->bd", alpha, batch_H)
    gx = context @ p["w_ih_x"].T + char_onehots @ p["w_ih_e"].T + p["b_ih"]
    gh = prev_hidden @ p["w_hh"].T + p["b_hh"]
    r = jax.nn.sigmoid(gx[:, :H] + gh[:, :H])
    z = jax.nn.sigmoid(gx[:, H:2 * H] + gh[:, H:2 * H])
    n = jnp.tanh(gx[:, 2 * H:] + r * gh[:, 2 * H:])
    h_new = (1.0 - z) * n + z * prev_hidden
    return h_new, alpha[:, None, :]


if __name__ == "__main__":
    B, T, L = 2, 8, 5
    input_size, hidden_size, num_embeddings = 32, 32, 16

    key = jax.random.PRNGKey(0)
    k_p, k_h, k_x, k_c = jax.random.split(key, 4)

    params = make_params(k_p, input_size, hidden_size, num_embeddings)
    kparams = pack_params(params)

    prev_hidden = jax.random.normal(k_h, (B, hidden_size), jnp.float32)
    batch_H = jax.random.normal(k_x, (B, T, input_size), jnp.float32)
    char_ids = jax.random.randint(k_c, (L, B), 0, num_embeddings)
    char_onehots_seq = jax.nn.one_hot(char_ids, num_embeddings,
                                      dtype=jnp.float32)               # (L, B, E)

    # --- Single-cell forward (module semantics) -----------------------------
    cur_hidden, alpha = attention_gru_cell(prev_hidden, batch_H,
                                           char_onehots_seq[0], kparams)
    jax.block_until_ready((cur_hidden, alpha))
    ref_h, ref_a = reference_forward(prev_hidden, batch_H,
                                     char_onehots_seq[0], params)
    # bf16 MXU operands (f32 accumulation) -> relaxed tolerance vs the f32 reference.
    np.testing.assert_allclose(np.asarray(cur_hidden), np.asarray(ref_h),
                               rtol=3e-2, atol=3e-2)
    np.testing.assert_allclose(np.asarray(alpha), np.asarray(ref_a),
                               rtol=3e-2, atol=3e-2)

    # --- Fused L-step decode (one pallas_call, VMEM-resident operands) ------
    h_seq, alpha_seq = attention_gru_decode(prev_hidden, batch_H,
                                            char_onehots_seq, kparams)
    jax.block_until_ready((h_seq, alpha_seq))

    h = prev_hidden
    ref_hs, ref_as = [], []
    for s in range(L):
        h, a = reference_forward(h, batch_H, char_onehots_seq[s], params)
        ref_hs.append(h)
        ref_as.append(a[:, 0, :])
    ref_h_seq = jnp.stack(ref_hs)        # (L, B, H)
    ref_a_seq = jnp.stack(ref_as)        # (L, B, T)
    np.testing.assert_allclose(np.asarray(h_seq), np.asarray(ref_h_seq),
                               rtol=6e-2, atol=6e-2)
    np.testing.assert_allclose(np.asarray(alpha_seq), np.asarray(ref_a_seq),
                               rtol=6e-2, atol=6e-2)

    print("KERNEL_OK")
</pallas_src>

<mosaic_0001>
module attributes {stable_mosaic.version = 11 : i64} {
  func.func @_i2h_kernel(%arg0: i32, %arg1: memref<16x32xbf16, #tpu.memory_space<vmem>>, %arg2: memref<32x32xbf16, #tpu.memory_space<vmem>>, %arg3: memref<16x32xbf16, #tpu.memory_space<vmem>>) attributes {dimension_semantics = [#tpu.dimension_semantics<parallel>], iteration_bounds = array<i64: 1>, scalar_prefetch = 0 : i64, scratch_operands = 0 : i64, tpu.core_type = #tpu.core_type<tc>, window_params = [{transform_indices = @transform_0, window_bounds = array<i64: 16, 32>}, {pipeline_mode = #tpu.pipeline_mode<synchronous>, transform_indices = @transform_1, window_bounds = array<i64: 32, 32>}, {transform_indices = @transform_2, window_bounds = array<i64: 16, 32>}]} {
    %c0 = arith.constant 0 : index
    %c0_0 = arith.constant 0 : index
    %0 = vector.load %arg1[%c0, %c0_0] : memref<16x32xbf16, #tpu.memory_space<vmem>>, vector<16x32xbf16>
    %c0_1 = arith.constant 0 : index
    %c0_2 = arith.constant 0 : index
    %1 = vector.load %arg2[%c0_1, %c0_2] : memref<32x32xbf16, #tpu.memory_space<vmem>>, vector<32x32xbf16>
    %cst = arith.constant dense<0.000000e+00> : vector<16x32xf32>
    %2 = tpu.matmul %0, %1, %cst {dimension_numbers = #tpu.dot_dimension_numbers<[1], [0], [0], [1], [0, 0, 1, 1], [], []>} : vector<16x32xbf16>, vector<32x32xbf16>, vector<16x32xf32> -> vector<16x32xf32>
    %3 = arith.truncf %2 : vector<16x32xf32> to vector<16x32xbf16>
    %c0_3 = arith.constant 0 : index
    %c0_4 = arith.constant 0 : index
    %4 = vector.load %arg3[%c0_3, %c0_4] : memref<16x32xbf16, #tpu.memory_space<vmem>>, vector<16x32xbf16>
    tpu.vector_store %arg3[%c0_3, %c0_4], %3 {strides = array<i32>} : memref<16x32xbf16, #tpu.memory_space<vmem>>, vector<16x32xbf16>,
    return
  }
  func.func @transform_0(%arg0: i32) -> (i32, i32) {
    %c0_i32 = arith.constant 0 : i32
    %c0_i32_0 = arith.constant 0 : i32
    return %arg0, %c0_i32 : i32, i32
  }
  func.func @transform_1(%arg0: i32) -> (i32, i32) {
    %c0_i32 = arith.constant 0 : i32
    %c0_i32_0 = arith.constant 0 : i32
    %c0_i32_1 = arith.constant 0 : i32
    return %c0_i32, %c0_i32_0 : i32, i32
  }
  func.func @transform_2(%arg0: i32) -> (i32, i32) {
    %c0_i32 = arith.constant 0 : i32
    %c0_i32_0 = arith.constant 0 : i32
    return %arg0, %c0_i32 : i32, i32
  }
}

</mosaic_0001>

<bundles_post_ra>
// kernel: tpu_custom_call.1
= control target key start
LH: loop header
LB: loop body
LE: loop exit
PB: predicated region body
PF: predicated region fallthrough
CT: control target
= control target key end

     0   :  { %7 = vsyncpa [#allocation3], 0  ;;  %s306_s0 = inlined_call_operand.hbm [shape: bf16[16,32], index: 0, kind: input, shape index: {}]   ;;  %s307_s1 = inlined_call_operand.hbm [shape: bf16[32,32], index: 1, kind: input, shape index: {}]   ;;  %s308_s2 = inlined_call_operand.hbm [shape: bf16[16,32], index: 2, kind: output, shape index: {}]  }
   0x1   :  { %8 = vsyncpa [#allocation6], 0 }
   0x2   :  { %9 = vsyncpa [#allocation4], 0  ;;  %s239_s9 = smov [#allocation2]   ;;  %s167_s13 = scalar_lea.hbm %s306_s0, 128 }
   0x3   :  { %s15_s10 = sshll.u32 %s239_s9, 4  ;;  %p168_p0 = scmp.ne.s32.totalorder %s306_s0, %s167_s13  ;;  %s16_s10 = int_to_ptr.vmem [resolvable:$true] %s15_s10 }
   0x4   :  { %p171_p1 = scmp.lt.u32.totalorder %s167_s13, %s306_s0 }
   0x6   :  { %p173_p2 = pnand %p171_p1, %p168_p0 }
   0x8   :  { %176 = shalt.err (!%p173_p2)
}
   0x9   :  { %s177_s18 = scalar_lea.vmem %s16_s10, 128  ;;  %p182_p4 = scmp.lt.s32.totalorder %s16_s10, %s16_s10 }
   0xa   :  { %p178_p3 = scmp.ne.s32.totalorder %s16_s10, %s177_s18  ;;  %p183_p5 = scmp.lt.s32.totalorder %s177_s18, %s177_s18 }
   0xc   :  { %p184_p6 = por %p183_p5, %p182_p4 }
   0xe   :  { %p185_p7 = pnand %p184_p6, %p178_p3 }
  0x10   :  { %188 = shalt.err (!%p185_p7)
}
  0x11   :  { %s240_s19 = smov 64   ;;  %s241_s20 = smov 4  }
  0x12   :  { %21 = dma.hbm_to_vmem [thread:$0]  %s306_s0, 128, %s16_s10, [#allocation3], %s240_s19, %s240_s19, %s241_s20  }
  0x13   :  { %s242_s23 = smov [#allocation5]   ;;  %s189_s27 = scalar_lea.hbm %s307_s1, 256 }
  0x14   :  { %s27_s24 = sshll.u32 %s242_s23, 4  ;;  %p190_p8 = scmp.ne.s32.totalorder %s307_s1, %s189_s27  ;;  %s28_s24 = int_to_ptr.vmem [resolvable:$true] %s27_s24 }
  0x15   :  { %p193_p9 = scmp.lt.u32.totalorder %s189_s27, %s307_s1 }
  0x17   :  { %p195_p10 = pnand %p193_p9, %p190_p8 }
  0x19   :  { %198 = shalt.err (!%p195_p10)
}
  0x1a   :  { %s199_s4 = scalar_lea.vmem %s28_s24, 256  ;;  %p204_p12 = scmp.lt.s32.totalorder %s28_s24, %s28_s24 }
  0x1b   :  { %p200_p11 = scmp.ne.s32.totalorder %s28_s24, %s199_s4  ;;  %p205_p13 = scmp.lt.s32.totalorder %s199_s4, %s199_s4 }
  0x1d   :  { %p206_p0 = por %p205_p13, %p204_p12 }
  0x1f   :  { %p207_p1 = pnand %p206_p0, %p200_p11 }
  0x21   :  { %210 = shalt.err (!%p207_p1)
}
  0x22   :  { %33 = dma.hbm_to_vmem [thread:$0]  %s307_s1, 256, %s28_s24, [#allocation6], %s240_s19, %s240_s19, %s241_s20  }
  0x23   :  { %233 = dma.done.wait [#allocation3], 128  }
  0x24   :  { %234 = vsyncadd [#allocation3], 4294967168 }
  0x25   :  { %235 = dma.done.wait [#allocation6], 256  }
  0x26   :  { %236 = vsyncadd [#allocation6], 4294967040  ;;  %v243_v0 = vmov 0.0   ;;  %vm244_vm0 = vmmov 0   ;;  %v164_v1 = vld [vmem:[#allocation5] sm:$0xff]   ;;  %v165_v2 = vld [vmem:[#allocation5 + $0x8] sm:$0xff]  }
  0x27   :  { %149 = vmatprep.subr.bf16.mxu0 %v243_v0  ;;  %153 = vmatprep.mubr.msk.bf16.mxu0 %vm244_vm0, %v243_v0  ;;  %v166_v3 = vld [vmem:[#allocation2] sm:$0xff]   ;;  %vm64_vm1 = vcmask 261120   ;;  %vm117_vm2 = vcmask 257024   ;;  %s245_s6 = smov [#allocation7]  }
  0x28   :  { %150 = vmatpush3.bf16.msra.mxu0 %v164_v1  ;;  %s125_s1 = sshll.u32 %s245_s6, 4  ;;  %s126_s1 = int_to_ptr.vmem [resolvable:$true] %s125_s1 }
  0x29   :  { %151 = vmatprep.subr.bf16.mxu0 %v243_v0  ;;  %s211_s7 = scalar_lea.vmem %s126_s1, 128  ;;  %p216_p3 = scmp.lt.s32.totalorder %s126_s1, %s126_s1 }
  0x2a   :  { %p212_p2 = scmp.ne.s32.totalorder %s126_s1, %s211_s7  ;;  %p217_p4 = scmp.lt.s32.totalorder %s211_s7, %s211_s7 }
  0x2c   :  { %152 = vmatpush3.bf16.msra.mxu0 %v165_v2  ;;  %p218_p5 = por %p217_p4, %p216_p3 }
  0x2e   :  { %p219_p6 = pnand %p218_p5, %p212_p2 }
  0x2f   :  { %154 = vmatmul.mubr.msk.bf16.vlgmr.msra.gmra.mrb[0].mxu0 %vm64_vm1, %v166_v3 }
 0x102   :  { %v102_v4 = vpop.f32.mrb[0].mxu0 }
 0x103   :  { %v144_v5 = vpack.c.bf16 %v102_v4, %v102_v4  ;;  %v155_v6 = vpop.f32.mrb[1].mxu0 }
 0x104   :  { %v105_v7 = vpop.f32.mrb[2].mxu0 }
 0x105   :  { %v145_v8 = vpack.c.bf16 %v105_v7, %v105_v7  ;;  %v156_v9 = vpop.f32.mrb[3].mxu0  ;;  %118 = vst.msk [vmem:[#allocation7] sm:$0xf] %vm117_vm2, %v144_v5 }
 0x107   :  { %119 = vst.msk [vmem:[#allocation7 + $0x4] sm:$0xf] %vm117_vm2, %v145_v8 }
 0x108   :  { %222 = shalt.err (!%p219_p6)
}
 0x109   :  { %s223_s10 = scalar_lea.hbm %s308_s2, 128 }
 0x10a   :  { %p224_p7 = scmp.ne.s32.totalorder %s308_s2, %s223_s10  ;;  %p227_p8 = scmp.lt.u32.totalorder %s223_s10, %s308_s2 }
 0x10c   :  { %p229_p9 = pnand %p227_p8, %p224_p7 }
 0x10e   :  { %232 = shalt.err (!%p229_p9)
}
 0x10f   :  { %131 = dma.vmem_to_hbm [thread:$0]  %s126_s1, 128, %s308_s2, [#allocation4], %s240_s19, %s240_s19, %s241_s20  }
 0x110   :  { %237 = dma.done.wait [#allocation4], 128  }
 0x111   :  { %238 = vsyncadd [#allocation4], 4294967168 }
 0x112   :  { %135 = vsyncpa [#allocation3], 1 }
 0x113   :  { %136 = vsyncpa [#allocation6], 1 }
 0x114   :  { %137 = vsyncpa [#allocation4], 1 }

</bundles_post_ra>
